<compile_context>
chip_gen: v6e
topology: v6e:2x2x1
jax: 0.10.0
libtpu: 0.0.40
codegen_flags: <defaults>
</compile_context>

<pallas_src>
import functools

import jax
import jax.numpy as jnp
from jax import lax
from jax.experimental import pallas as pl
from jax.experimental.pallas import tpu as pltpu


# -----------------------------------------------------------------------------
# Pass 1: conv (single MXU contraction) + bias, lane-dense output, partial
#         per-channel BN statistics (sum, sum of squares).
# -----------------------------------------------------------------------------
def _conv_stats_kernel(cols_ref, w_ref, b_ref, y_ref, s_ref, q_ref):
    # cols_ref: (1, KKC, TR)    im2col block (one batch element, one row tile)
    # w_ref   : (Co, KKC)       flattened conv weight
    # b_ref   : (Co, 1)         conv bias
    # y_ref   : (1, Co, TR)     conv + bias output (f32), lane-dense store
    # s_ref   : (1, 1, Co, 1)   partial per-channel sum
    # q_ref   : (1, 1, Co, 1)   partial per-channel sum of squares
    cols = cols_ref[0]                                      # (KKC, TR)
    acc = jnp.dot(w_ref[...], cols,
                  preferred_element_type=jnp.float32)       # (Co, TR) on MXU
    acc = acc + b_ref[...]                                  # lane broadcast
    y_ref[...] = acc[None].astype(y_ref.dtype)
    # one-pass stats: sum and sum-of-squares (lane-axis reduction -> XLU)
    s_ref[...] = jnp.sum(acc, axis=1, keepdims=True)[None, None]
    q_ref[...] = jnp.sum(acc * acc, axis=1, keepdims=True)[None, None]


# -----------------------------------------------------------------------------
# Pass 2: y * scale + shift, LeakyReLU(neg_slope).  scale/shift fold gamma,
#         beta, batch mean and rsqrt(var + eps).
# -----------------------------------------------------------------------------
def _bn_act_kernel(y_ref, sc_ref, sh_ref, o_ref, *, neg_slope):
    # y_ref: (1, Co, TR); sc_ref/sh_ref: (Co, 1); o_ref: (1, Co, TR)
    z = y_ref[0] * sc_ref[...] + sh_ref[...]
    o_ref[...] = jnp.where(z > 0, z, neg_slope * z)[None].astype(o_ref.dtype)


def _im2col_nchw(xp, KH, KW, H_out, W_out, stride):
    """(N, Cin, Hp, Wp) padded input -> (N, KH*KW*Cin, H_out*W_out)."""
    N, Cin, _, _ = xp.shape
    taps = []
    for kh in range(KH):
        for kw in range(KW):
            taps.append(lax.slice(
                xp,
                (0, 0, kh, kw),
                (N, Cin,
                 kh + (H_out - 1) * stride + 1,
                 kw + (W_out - 1) * stride + 1),
                (1, 1, stride, stride)))                    # (N, Cin, Ho, Wo)
    cols = jnp.concatenate(taps, axis=1)                    # tap-major, then cin
    return cols.reshape(N, KH * KW * Cin, H_out * W_out)


def conv_block_forward(x_nchw, w_oihw, bias, gamma, beta, *,
                       stride, padding, eps=1e-5, neg_slope=0.1):
    """ConvBlock forward. Input NCHW, weight OIHW (PyTorch conventions)."""
    N, Cin, H, W = x_nchw.shape
    Cout, _, KH, KW = w_oihw.shape
    H_out = (H + 2 * padding - KH) // stride + 1
    W_out = (W + 2 * padding - KW) // stride + 1
    rows = H_out * W_out
    KKC = KH * KW * Cin

    # Lane-dense row tile (minor dim everywhere); fall back to full rows if
    # they don't tile by 128.
    TR = 128 if rows % 128 == 0 else rows
    n_rb = rows // TR

    # Glue in plain JAX: spatial padding + im2col + weight flattening.
    xp = jnp.pad(x_nchw,
                 ((0, 0), (0, 0), (padding, padding), (padding, padding)))
    cols = _im2col_nchw(xp, KH, KW, H_out, W_out, stride)   # (N, KKC, rows)
    w2 = jnp.transpose(w_oihw, (0, 2, 3, 1)).reshape(Cout, KKC)
    b2 = bias.reshape(Cout, 1)

    cparams = pltpu.CompilerParams(
        dimension_semantics=("parallel", "parallel"),
        vmem_limit_bytes=32 * 1024 * 1024)

    # ---- pass 1: conv + bias + partial BN stats ------------------------------
    y, ps, pq = pl.pallas_call(
        _conv_stats_kernel,
        out_shape=(jax.ShapeDtypeStruct((N, Cout, rows), jnp.float32),
                   jax.ShapeDtypeStruct((N, n_rb, Cout, 1), jnp.float32),
                   jax.ShapeDtypeStruct((N, n_rb, Cout, 1), jnp.float32)),
        grid_spec=pltpu.PrefetchScalarGridSpec(
            num_scalar_prefetch=0,
            grid=(N, n_rb),
            in_specs=[
                pl.BlockSpec((1, KKC, TR), lambda n, r: (n, 0, r)),
                pl.BlockSpec((Cout, KKC), lambda n, r: (0, 0)),
                pl.BlockSpec((Cout, 1), lambda n, r: (0, 0)),
            ],
            out_specs=(
                pl.BlockSpec((1, Cout, TR), lambda n, r: (n, 0, r)),
                pl.BlockSpec((1, 1, Cout, 1), lambda n, r: (n, r, 0, 0)),
                pl.BlockSpec((1, 1, Cout, 1), lambda n, r: (n, r, 0, 0)),
            )),
        compiler_params=cparams,
    )(cols.astype(jnp.float32), w2.astype(jnp.float32), b2.astype(jnp.float32))

    # ---- tiny cross-tile fold (N * n_rb * Cout * 2 numbers) ------------------
    count = jnp.float32(N * rows)
    ch_sum = jnp.sum(ps, axis=(0, 1, 3))                    # (Cout,)
    ch_sq = jnp.sum(pq, axis=(0, 1, 3))                     # (Cout,)
    mean = ch_sum / count
    var = jnp.maximum(ch_sq / count - mean * mean, 0.0)     # biased (train-mode)
    rstd = lax.rsqrt(var + eps)
    g32 = gamma.astype(jnp.float32)
    scale = (g32 * rstd).reshape(Cout, 1)
    shift = (beta.astype(jnp.float32) - mean * g32 * rstd).reshape(Cout, 1)
    # TODO(synk): running_mean / running_var momentum updates (stateful BN side
    # effect) are not materialized; they do not affect the forward output.

    # ---- pass 2: normalize + affine + LeakyReLU ------------------------------
    out = pl.pallas_call(
        functools.partial(_bn_act_kernel, neg_slope=neg_slope),
        out_shape=jax.ShapeDtypeStruct((N, Cout, rows), x_nchw.dtype),
        grid_spec=pltpu.PrefetchScalarGridSpec(
            num_scalar_prefetch=0,
            grid=(N, n_rb),
            in_specs=[
                pl.BlockSpec((1, Cout, TR), lambda n, r: (n, 0, r)),
                pl.BlockSpec((Cout, 1), lambda n, r: (0, 0)),
                pl.BlockSpec((Cout, 1), lambda n, r: (0, 0)),
            ],
            out_specs=pl.BlockSpec((1, Cout, TR), lambda n, r: (n, 0, r))),
        compiler_params=cparams,
    )(y, scale, shift)

    return out.reshape(N, Cout, H_out, W_out)               # NCHW, no transpose


def conv_block_reference(x_nchw, w_oihw, bias, gamma, beta, *,
                         stride, padding, eps=1e-5, neg_slope=0.1):
    """Pure-JAX reference (mirrors PyTorch train-mode semantics)."""
    y = lax.conv_general_dilated(
        x_nchw, w_oihw,
        window_strides=(stride, stride),
        padding=[(padding, padding), (padding, padding)],
        dimension_numbers=("NCHW", "OIHW", "NCHW"),
        precision=lax.Precision.HIGHEST)
    y = y + bias[None, :, None, None]
    mean = jnp.mean(y, axis=(0, 2, 3), keepdims=True)
    var = jnp.mean(jnp.square(y - mean), axis=(0, 2, 3), keepdims=True)
    y = (y - mean) * lax.rsqrt(var + eps)
    y = y * gamma[None, :, None, None] + beta[None, :, None, None]
    return jnp.where(y > 0, y, neg_slope * y)


if __name__ == "__main__":
    # ConvBlock(in_channels=4, out_channels=8, kernel_size=3, stride=1, padding=1)
    N, Cin, H, W = 2, 4, 16, 16
    Cout, K, stride, padding = 8, 3, 1, 1

    key = jax.random.PRNGKey(0)
    kx, kw, kb, kg, kbt = jax.random.split(key, 5)

    x = jax.random.normal(kx, (N, Cin, H, W), jnp.float32)
    w = jax.random.normal(kw, (Cout, Cin, K, K), jnp.float32) * 0.1
    bias = jax.random.normal(kb, (Cout,), jnp.float32) * 0.05
    gamma = 1.0 + 0.1 * jax.random.normal(kg, (Cout,), jnp.float32)
    beta = 0.1 * jax.random.normal(kbt, (Cout,), jnp.float32)

    out = conv_block_forward(x, w, bias, gamma, beta,
                             stride=stride, padding=padding)
    out = jax.block_until_ready(out)

    ref = conv_block_reference(x, w, bias, gamma, beta,
                               stride=stride, padding=padding)
    assert out.shape == (N, Cout, H, W)
    assert jnp.allclose(out, ref, atol=1e-4, rtol=1e-4)

    print("KERNEL_OK")
</pallas_src>

<mosaic_0001>
module attributes {stable_mosaic.version = 11 : i64} {
  func.func @_conv_stats_kernel(%arg0: i32, %arg1: i32, %arg2: memref<1x36x128xf32, #tpu.memory_space<vmem>>, %arg3: memref<8x36xf32, #tpu.memory_space<vmem>>, %arg4: memref<8x1xf32, #tpu.memory_space<vmem>>, %arg5: memref<1x8x128xf32, #tpu.memory_space<vmem>>, %arg6: memref<1x1x8x1xf32, #tpu.memory_space<vmem>>, %arg7: memref<1x1x8x1xf32, #tpu.memory_space<vmem>>) attributes {dimension_semantics = [#tpu.dimension_semantics<parallel>, #tpu.dimension_semantics<parallel>], iteration_bounds = array<i64: 2, 2>, scalar_prefetch = 0 : i64, scratch_operands = 0 : i64, tpu.core_type = #tpu.core_type<tc>, window_params = [{transform_indices = @transform_0, window_bounds = array<i64: 1, 36, 128>}, {pipeline_mode = #tpu.pipeline_mode<synchronous>, transform_indices = @transform_1, window_bounds = array<i64: 8, 36>}, {pipeline_mode = #tpu.pipeline_mode<synchronous>, transform_indices = @transform_2, window_bounds = array<i64: 8, 1>}, {transform_indices = @transform_3, window_bounds = array<i64: 1, 8, 128>}, {transform_indices = @transform_4, window_bounds = array<i64: 1, 1, 8, 1>}, {transform_indices = @transform_5, window_bounds = array<i64: 1, 1, 8, 1>}]} {
    %c0 = arith.constant 0 : index
    %c0_0 = arith.constant 0 : index
    %c0_1 = arith.constant 0 : index
    %0 = vector.load %arg2[%c0, %c0_0, %c0_1] : memref<1x36x128xf32, #tpu.memory_space<vmem>>, vector<1x36x128xf32>
    %1 = vector.shape_cast %0 : vector<1x36x128xf32> to vector<36x128xf32>
    %c0_2 = arith.constant 0 : index
    %c0_3 = arith.constant 0 : index
    %2 = vector.load %arg3[%c0_2, %c0_3] : memref<8x36xf32, #tpu.memory_space<vmem>>, vector<8x36xf32>
    %cst = arith.constant dense<0.000000e+00> : vector<8x128xf32>
    %3 = tpu.matmul %2, %1, %cst {dimension_numbers = #tpu.dot_dimension_numbers<[1], [0], [0], [1], [0, 0, 1, 1], [], []>} : vector<8x36xf32>, vector<36x128xf32>, vector<8x128xf32> -> vector<8x128xf32>
    %c0_4 = arith.constant 0 : index
    %c0_5 = arith.constant 0 : index
    %4 = vector.load %arg4[%c0_4, %c0_5] : memref<8x1xf32, #tpu.memory_space<vmem>>, vector<8x1xf32>
    %5 = vector.broadcast %4 : vector<8x1xf32> to vector<8x128xf32>
    %6 = arith.addf %3, %5 : vector<8x128xf32>
    %7 = vector.shape_cast %6 : vector<8x128xf32> to vector<1x8x128xf32>
    %c0_6 = arith.constant 0 : index
    %c0_7 = arith.constant 0 : index
    %c0_8 = arith.constant 0 : index
    %8 = vector.load %arg5[%c0_6, %c0_7, %c0_8] : memref<1x8x128xf32, #tpu.memory_space<vmem>>, vector<1x8x128xf32>
    tpu.vector_store %arg5[%c0_6, %c0_7, %c0_8], %7 {strides = array<i32>} : memref<1x8x128xf32, #tpu.memory_space<vmem>>, vector<1x8x128xf32>,
    %cst_9 = arith.constant dense<0.000000e+00> : vector<8xf32>
    %9 = vector.multi_reduction <add>, %6, %cst_9 [1] : vector<8x128xf32> to vector<8xf32>
    %10 = vector.shape_cast %9 : vector<8xf32> to vector<8x1xf32>
    %11 = vector.shape_cast %10 : vector<8x1xf32> to vector<1x1x8x1xf32>
    %c0_10 = arith.constant 0 : index
    %c0_11 = arith.constant 0 : index
    %c0_12 = arith.constant 0 : index
    %c0_13 = arith.constant 0 : index
    %12 = vector.load %arg6[%c0_10, %c0_11, %c0_12, %c0_13] : memref<1x1x8x1xf32, #tpu.memory_space<vmem>>, vector<1x1x8x1xf32>
    tpu.vector_store %arg6[%c0_10, %c0_11, %c0_12, %c0_13], %11 {strides = array<i32>} : memref<1x1x8x1xf32, #tpu.memory_space<vmem>>, vector<1x1x8x1xf32>,
    %13 = arith.mulf %6, %6 : vector<8x128xf32>
    %cst_14 = arith.constant dense<0.000000e+00> : vector<8xf32>
    %14 = vector.multi_reduction <add>, %13, %cst_14 [1] : vector<8x128xf32> to vector<8xf32>
    %15 = vector.shape_cast %14 : vector<8xf32> to vector<8x1xf32>
    %16 = vector.shape_cast %15 : vector<8x1xf32> to vector<1x1x8x1xf32>
    %c0_15 = arith.constant 0 : index
    %c0_16 = arith.constant 0 : index
    %c0_17 = arith.constant 0 : index
    %c0_18 = arith.constant 0 : index
    %17 = vector.load %arg7[%c0_15, %c0_16, %c0_17, %c0_18] : memref<1x1x8x1xf32, #tpu.memory_space<vmem>>, vector<1x1x8x1xf32>
    tpu.vector_store %arg7[%c0_15, %c0_16, %c0_17, %c0_18], %16 {strides = array<i32>} : memref<1x1x8x1xf32, #tpu.memory_space<vmem>>, vector<1x1x8x1xf32>,
    return
  }
  func.func @transform_0(%arg0: i32, %arg1: i32) -> (i32, i32, i32) {
    %c0_i32 = arith.constant 0 : i32
    %c0_i32_0 = arith.constant 0 : i32
    return %arg0, %c0_i32, %arg1 : i32, i32, i32
  }
  func.func @transform_1(%arg0: i32, %arg1: i32) -> (i32, i32) {
    %c0_i32 = arith.constant 0 : i32
    %c0_i32_0 = arith.constant 0 : i32
    %c0_i32_1 = arith.constant 0 : i32
    return %c0_i32, %c0_i32_0 : i32, i32
  }
  func.func @transform_2(%arg0: i32, %arg1: i32) -> (i32, i32) {
    %c0_i32 = arith.constant 0 : i32
    %c0_i32_0 = arith.constant 0 : i32
    %c0_i32_1 = arith.constant 0 : i32
    return %c0_i32, %c0_i32_0 : i32, i32
  }
  func.func @transform_3(%arg0: i32, %arg1: i32) -> (i32, i32, i32) {
    %c0_i32 = arith.constant 0 : i32
    %c0_i32_0 = arith.constant 0 : i32
    return %arg0, %c0_i32, %arg1 : i32, i32, i32
  }
  func.func @transform_4(%arg0: i32, %arg1: i32) -> (i32, i32, i32, i32) {
    %c0_i32 = arith.constant 0 : i32
    %c0_i32_0 = arith.constant 0 : i32
    %c0_i32_1 = arith.constant 0 : i32
    return %arg0, %arg1, %c0_i32, %c0_i32_0 : i32, i32, i32, i32
  }
  func.func @transform_5(%arg0: i32, %arg1: i32) -> (i32, i32, i32, i32) {
    %c0_i32 = arith.constant 0 : i32
    %c0_i32_0 = arith.constant 0 : i32
    %c0_i32_1 = arith.constant 0 : i32
    return %arg0, %arg1, %c0_i32, %c0_i32_0 : i32, i32, i32, i32
  }
}

</mosaic_0001>

<bundles_post_ra>
// kernel: tpu_custom_call.1
= control target key start
LH: loop header
LB: loop body
LE: loop exit
PB: predicated region body
PF: predicated region fallthrough
CT: control target
= control target key end

     0   :  { %s1017_s0 = inlined_call_operand.vmem [shape: f32[2,36,256], index: 0, kind: input, shape index: {}]   ;;  %s1018_s1 = inlined_call_operand.vmem [shape: f32[8,36], index: 1, kind: input, shape index: {}]   ;;  %s1019_s2 = inlined_call_operand.vmem [shape: f32[8,1], index: 2, kind: input, shape index: {}]   ;;  %s1020_s3 = inlined_call_operand.hbm [shape: f32[2,8,256], index: 3, kind: output, shape index: {0}]   ;;  %s1021_s4 = inlined_call_operand.vmem [shape: f32[2,2,8,1], index: 4, kind: output, shape index: {1}]   ;;  %s1022_s5 = inlined_call_operand.vmem [shape: f32[2,2,8,1], index: 5, kind: output, shape index: {2}]  }
   0x1   :  { %1023 = sst [smem:[#allocation6_spill]] %s1017_s0 }
   0x2   :  { %1024 = sst [smem:[#allocation7_spill]] %s1018_s1 }
   0x3   :  { %11 = vsyncpa [#allocation4], 0 }
   0x4   :  { %13 = vsyncpa [#allocation4 + $0x1], 0  ;;  %s865_s18 = smov 0   ;;  %s867_s19 = smov 0  }
   0x5   :  { %s869_s20 = smov 0   ;;  %s871_s21 = smov 0  }
   0x6   :  { %s873_s22 = smov 0   ;;  %s875_s23 = smov 0  }
   0x7   :  { %s877_s24 = smov 0   ;;  %s879_s25 = smov 0  }
   0x8 LB: > { %s622_s26 = sadd.s32 4294967295, %s829_s25   ;;  %s623_s27 = sadd.s32 4294967294, %s829_s25   ;;  %s829_s25 = sphi %s879_s25, %s19_s25   ;;  %s825_s24 = sphi %s877_s24, %s1036_s24   ;;  %s821_s23 = sphi %s875_s23, %s1035_s23   ;;  %s817_s22 = sphi %s873_s22, %s1034_s22   ;;  %s813_s21 = sphi %s871_s21, %s1033_s21   ;;  %s809_s20 = sphi %s869_s20, %s1032_s20   ;;  %s805_s19 = sphi %s867_s19, %s1031_s19   ;;  %s801_s18 = sphi %s865_s18, %s1030_s18  }
   0x9   : > { %s28_s28 = sadd.s32 1, %s821_s23  ;;  %s31_s29 = sadd.s32 1, %s825_s24 }
   0xa   : > { %p29_p0 = scmp.ge.s32.totalorder %s28_s28, 2  ;;  %p47_p1 = scmp.ne.s32.totalorder %s809_s20, %s805_s19 }
   0xb   : > { %p48_p2 = scmp.eq.s32.totalorder %s829_s25, 0  ;;  %p121_p5 = scmp.eq.s32.totalorder %s622_s26, 3 }
   0xc   : > { %s1038_s28 = smov (%p29_p0, %s28_s28), 0  ;;  %s1040_s29 = smov (!%p29_p0, %s31_s29), %s825_s24 }
   0xd   : > { %s36_s30 = ssub.s32 %s821_s23, %s1038_s28  ;;  %p917_p3 = por %p48_p2, %p47_p1 }
   0xe   : > { %p33_p4 = scmp.ge.s32.totalorder %s1040_s29, 2  ;;  %p126_p6 = scmp.ne.s32.totalorder %s805_s19, %s801_s18 }
   0xf   : > { %p127_p7 = scmp.eq.s32.totalorder %s623_s27, 3  ;;  %p925_p8 = por %p121_p5, %p47_p1 }
  0x10   : > { %s1042_s29 = smov (%p33_p4, %s1040_s29), 0  ;;  %s40_s11 = sadd.s32 1, %s809_s20 }
  0x11   : > { %p929_p9 = por %p127_p7, %p126_p6  ;;  %s35_s9 = ssub.s32 %s825_s24, %s1042_s29 }
  0x12   : > { %s37_s10 = sor.u32 %s36_s30, %s35_s9  ;;  %p625_p11 = scmp.ge.s32.totalorder %s829_s25, 4 }
  0x13   : > { %p38_p10 = scmp.eq.s32.totalorder %s37_s10, 0 }
  0x14   : > { %205 = sbr.rel (%p625_p11) target bundleno = 37 (0x25), region = 24 }
  0x15   : > { %s937_s12 = scalar_select %p38_p10, %s809_s20, %s40_s11  }
  0x19   : > { %208 = sbr.rel (!%p917_p3) target bundleno = 37 (0x25), region = 28  ;;  %s210_s13 = sand.u32 (%p917_p3), 1, %s809_s20  }
  0x1a   : > { %s660_s14 = smul.u32 (%p917_p3), 10, %s825_s24  ;;  %s1028_s0 = sld [smem:[#allocation6_spill]] (%p917_p3) }
  0x1b   : > { %s659_s15 = smul.u32 (%p917_p3), 40, %s210_s13 }
  0x1c   : > { %s214_s16 = sadd.s32 (%p917_p3), %s821_s23, %s660_s14 }
  0x1d   : > { %s626_s17 = sshll.u32 (%p917_p3), %s214_s16, 3  ;;  %s212_s9 = scalar_lea.vmem (%p917_p3), [#allocation2], %s659_s15 }
  0x20   : > { %s216_s30 = scalar_lea.vmem %s1028_s0, %s626_s17 }
  0x21   : > { %v253_v0 = vld [vmem:[%s216_s30] sm:$0xff]  ;;  %v255_v1 = vld [vmem:[%s216_s30 + $0x10] sm:$0xff] }
  0x22   : > { %v257_v2 = vld [vmem:[%s216_s30 + $0x20] sm:$0xff]  ;;  %254 = vst [vmem:[%s212_s9] sm:$0xff] %v253_v0  ;;  %256 = vst [vmem:[%s212_s9 + $0x8] sm:$0xff] %v255_v1  ;;  %v259_v3 = vld [vmem:[%s216_s30 + $0x30] sm:$0xff] }
  0x23   : > { %258 = vst [vmem:[%s212_s9 + $0x10] sm:$0xff] %v257_v2  ;;  %v261_v4 = vld [vmem:[%s216_s30 + $0x40] sm:$0xff]  ;;  %260 = vst [vmem:[%s212_s9 + $0x18] sm:$0xff] %v259_v3 }
  0x24   : > { %262 = vst [vmem:[%s212_s9 + $0x20] sm:$0xff] %v261_v4 }
  0x25 PF: > { %p627_p12 = scmp.ge.s32.totalorder %s829_s25, 1  ;;  %p267_p13 = scmp.lt.s32.totalorder %s829_s25, 5 }
  0x27   : > { %p268_p0 = pnand %p627_p12, %p267_p13 }
  0x28   : > { %s951_s6 = sand.u32 (!%p268_p0), 1, %s805_s19   ;;  %s1029_s1 = sld [smem:[#allocation7_spill]] (!%p268_p0) }
  0x29   : > { %271 = sbr.rel (%p268_p0) target bundleno = 393 (0x189), region = 66  ;;  %s628_s17 = sshll.u32 (!%p268_p0), %s951_s6, 3 }
  0x2a   : > { %s661_s10 = smul.u32 (!%p268_p0), 40, %s951_s6  ;;  %s296_s26 = scalar_lea.vmem (!%p268_p0), [#allocation3], %s628_s17 }
  0x2b   : > { %s636_s27 = sshll.u32 (!%p268_p0), %s817_s22, 1  ;;  %s433_s15 = scalar_lea.sflag (!%p268_p0), [#allocation4], %s951_s6 }
  0x2c   : > { %s276_s14 = scalar_lea.vmem (!%p268_p0), [#allocation2], %s661_s10  ;;  %s460_s30 = sadd.s32 (!%p268_p0), %s813_s21, %s636_s27 }
  0x2d   : > { %s637_s9 = sshll.u32 (!%p268_p0), %s460_s30, 7  ;;  %s834_s0 = smov (!%p268_p0), [#allocation3]  }
  0x2e   : > { %v831_v5 = vmov 0.0   ;;  %vm832_vm0 = vmmov 0   ;;  %v339_v6 = vld [vmem:[%s1019_s2] sm:$0xff]  ;;  %vm349_vm1 = vcmask 1043456   ;;  %v833_v7 = vmov 0   ;;  %v335_v10 = vld [vmem:[%s276_s14 + $0x10] sm:$0xff]  ;;  %s462_s13 = scalar_lea.hbm %s1020_s3, %s637_s9 }
  0x2f   : > { %646 = vmatprep.subr.mxu0 %v831_v5  ;;  %656 = vmatprep.mubr.msk.f32.mxu0 %vm832_vm0, %v831_v5  ;;  %v337_v8 = vld [vmem:[%s276_s14 + $0x20] sm:$0xf]  ;;  %v336_v9 = vld [vmem:[%s276_s14 + $0x18] sm:$0xff]  ;;  %v334_v11 = vld [vmem:[%s276_s14 + $0x8] sm:$0xff]  ;;  %vm345_vm2 = vcmask 293888  }
  0x30   : > { %736 = vset.pattern.permute.xlu0 %v833_v7  ;;  %647 = vmatpush3.msk.msra.mxu0 %vm349_vm1, %v337_v8  ;;  %v333_v12 = vld [vmem:[%s276_s14] sm:$0xff]  ;;  %s464_s14 = sshll.u32 %s296_s26, 4  ;;  %s465_s14 = int_to_ptr.vmem [resolvable:$true] %s464_s14 }
  0x31   : > { %342 = vperm.xlu0 %736, %v339_v6   ;;  %648 = vmatprep.subr.mxu0 %v831_v5  ;;  %v338_v13 = vld [vmem:[%s1029_s1] sm:$0xff]  ;;  %s737_s16 = scalar_lea.vmem %s465_s14, 128  ;;  %s741_s1 = sshll.u32 %s834_s0, 4  ;;  %s742_s1 = int_to_ptr.vmem [resolvable:$false] %s741_s1 }
  0x32   : > { %649 = vmatpush3.msra.mxu0 %v336_v9  ;;  %p738_p1 = scmp.ne.s32.totalorder %s465_s14, %s737_s16  ;;  %s743_s17 = scalar_lea.vmem %s742_s1, 256 }
  0x33   : > { %650 = vmatprep.subr.mxu0 %v831_v5  ;;  %p744_p4 = scmp.lt.s32.totalorder %s465_s14, %s742_s1  ;;  %p745_p5 = scmp.lt.s32.totalorder %s743_s17, %s737_s16 }
  0x34   : > { %651 = vmatpush3.msra.mxu0 %v335_v10  ;;  %p739_p2 = pnand %p738_p1, %p925_p8 }
  0x35   : > { %652 = vmatprep.subr.mxu0 %v831_v5  ;;  %p746_p6 = por %p745_p5, %p744_p4 }
  0x36   : > { %653 = vmatpush3.msra.mxu0 %v334_v11  ;;  %p740_p3 = pneg %p739_p2 }
  0x37   : > { %654 = vmatprep.subr.mxu0 %v831_v5 }
  0x38   : > { %655 = vmatpush3.msra.mxu0 %v333_v12  ;;  %p747_p7 = pnand %p746_p6, %p740_p3 }
  0x39   : > { %657 = vmatmul.mubr.msk.f32.vlgmr.msra.gmra.mxu0 %vm345_vm2, %v338_v13 }
  0xac   : > { %v343_v14 = vpop.permute.xlu0 %342 }
  0xf9   : > { %v419_v15 = vpop.f32.mrf.mxu0 }
  0xfa   : > { %v420_v16 = vadd.f32 %v419_v15, %v343_v14 }
  0xfb   : > { %v658_v17 = vpop.f32.mrf.mxu0 }
  0xfc   : > { %424 = vadd.xlane.f32.xlu0 %v420_v16  ;;  %v428_v18 = vmul.f32 %v420_v16, %v420_v16  ;;  %423 = vst [vmem:[%s296_s26] sm:$0xff] %v420_v16 }
  0xfe   : > { %429 = vadd.xlane.f32.xlu1 %v428_v18 }
  0xff   : > { %750 = shalt.err (!%p747_p7)
}
 0x100   : > { %s751_s27 = scalar_lea.hbm %s462_s13, 128  ;;  %s755_s30 = scalar_lea.hbm %s1020_s3, 512 }
 0x101   : > { %p752_p10 = scmp.ne.s32.totalorder %s462_s13, %s751_s27  ;;  %p756_p13 = scmp.lt.s32.totalorder %s462_s13, %s1020_s3 }
 0x102   : > { %p757_p0 = scmp.lt.s32.totalorder %s755_s30, %s751_s27 }
 0x103   : > { %p753_p11 = pnand %p752_p10, %p925_p8 }
 0x104   : > { %p758_p1 = por %p757_p0, %p756_p13 }
 0x105   : > { %p754_p12 = pneg %p753_p11 }
 0x107   : > { %p759_p2 = pnand %p758_p1, %p754_p12 }
 0x109   : > { %762 = shalt.err (!%p759_p2)
}
 0x10a   : > { %662 = dma.vmem_to_hbm [thread:$0]  (%p925_p8), %s465_s14, 128, %s462_s13, %s433_s15   ;;  %vm426_vm3 = vcmask 7168  }
 0x10b   : > { %p317_p3 = scmp.lt.s32.totalorder %s817_s22, 1  ;;  %p319_p4 = scmp.lt.s32.totalorder %s813_s21, 1 }
 0x10d   : > { %s1044_s22 = smov (!%p317_p3, %s817_s22), 1  ;;  %s1046_s21 = smov (!%p319_p4, %s813_s21), 1 }
 0x10e   : > { %s629_s0 = sshll.u32 %s1044_s22, 1 }
 0x10f   : > { %s322_s1 = sadd.s32 %s629_s0, %s1046_s21 }
 0x110   : > { %s630_s11 = sshll.u32 %s322_s1, 3 }
 0x111   : > { %s324_s27 = scalar_lea.vmem %s1021_s4, %s630_s11  ;;  %s332_s26 = scalar_lea.vmem %s1022_s5, %s630_s11 }
 0x185   : > { %v425_v19 = vpop.xlane.xlu0 %424 }
 0x186   : > { %427 = vst.msk [vmem:[%s324_s27] sm:$0xff] %vm426_vm3, %v425_v19 }
 0x187   : > { %v430_v20 = vpop.xlane.xlu1 %429 }
 0x188   : > { %431 = vst.msk [vmem:[%s332_s26] sm:$0xff] %vm426_vm3, %v430_v20 }
 0x189 PF: > { %p668_p8 = scmp.ge.s32.totalorder %s829_s25, 2  ;;  %s482_s21 = sand.u32 1, %s801_s18  }
 0x18a   : > { %s483_s22 = scalar_lea.sflag [#allocation4], %s482_s21 }
 0x18b   : > { %p665_p5 = pnand %p668_p8, %p929_p9 }
 0x18d   : > { %p666_p6 = pneg %p665_p5 }
 0x18f   : > { %796 = dma.done.wait (%p666_p6), %s483_s22, 128  }
 0x190   : > { %798 = vsyncadd (%p666_p6), %s483_s22, 4294967168  ;;  %s19_s25 = sadd.s32 1, %s829_s25   ;;  %s1030_s18 = smov %s805_s19 }
 0x191   : > { %p16_p7 = scmp.ge.s32.totalorder %s19_s25, 6   ;;  %s1031_s19 = smov %s809_s20 }
 0x192   : > { %s1032_s20 = smov %s937_s12  ;;  %s1033_s21 = smov %s821_s23 }
 0x193   : > { %s1034_s22 = smov %s825_s24  ;;  %s1035_s23 = smov %s1038_s28 }
 0x194   : > { %s1036_s24 = smov %s1042_s29  ;;  %18 = sbr.rel (!%p16_p7) target bundleno = 8 (0x8), region = 134 }
 0x199   :  { %510 = vsyncpa [#allocation4], 1 }
 0x19a   :  { %512 = vsyncpa [#allocation4 + $0x1], 1 }

</bundles_post_ra>
